<compile_context>
chip_gen: v5e
topology: v5e:2x2
jax: 0.10.0
libtpu: 0.0.40
codegen_flags: <defaults>
</compile_context>

<pallas_src>
import jax
import jax.numpy as jnp
from jax.experimental import pallas as pl
from jax.experimental.pallas import tpu as pltpu


_LANES = 128                      # lane width of a vreg
_SMALL_CUTOFF_ROWS = 1024         # <= this -> grid-free path (overhead-bound regime)
_MAX_TILE_GROUPS = 1024           # 1024 * 128 = 131072 rows/step  (~5 MiB x block)
_VMEM_LIMIT_BYTES = 48 * 1024 * 1024   # safe on v5e/v6e (128 MiB) and v7x (64 MiB/TC)


def _round_up(x, m):
    return ((x + m - 1) // m) * m


def _cost_estimate(rows, d_in, d_hid, itemsize=4):
    flops = rows * (2 * d_in * d_hid + 4 * d_hid + 1)       # fc1 + bias/relu + fc2
    bytes_accessed = itemsize * (rows * d_in + rows          # x in, y out
                                 + d_in * d_hid + 2 * d_hid + 1)
    return pl.CostEstimate(flops=flops, transcendentals=0,
                           bytes_accessed=bytes_accessed)


# ---------------------------------------------------------------------------
# Kernel (shared by the grid-free small path and the gridded large path)
# ---------------------------------------------------------------------------
def _mlp_kernel(x_ref, w1_ref, b1_ref, w2_ref, b2_ref, o_ref):
    """Fused fc1 -> ReLU -> fc2 on a feature-major activation block.

    x_ref : (d_in, G, 128) f32, VMEM -- batch dense over (sublane, lane)
    w1_ref: (d_in, d_hid)  f32, SMEM
    b1_ref: (d_hid,)       f32, SMEM
    w2_ref: (d_hid,)       f32, SMEM
    b2_ref: (1,)           f32, SMEM
    o_ref : (G, 128)            VMEM -- lane-dense output slab
    """
    d_in = x_ref.shape[0]
    d_hid = w1_ref.shape[1]
    acc = None
    for j in range(d_hid):                       # 5  -- fully unrolled
        h = x_ref[0] * w1_ref[0, j]              # scalar-broadcast VPU mul
        for k in range(1, d_in):                 # 10 -- fully unrolled
            h = h + x_ref[k] * w1_ref[k, j]
        h = jnp.maximum(h + b1_ref[j], 0.0)      # bias + ReLU
        term = h * w2_ref[j]                     # fc2 contribution
        acc = term if acc is None else acc + term
    o_ref[...] = (acc + b2_ref[0]).astype(o_ref.dtype)


# ---------------------------------------------------------------------------
# Wrappers
# ---------------------------------------------------------------------------
def _net_forward_small(xt3, w1, b1, w2, b2, out_dtype):
    # Grid-free: every operand whole in VMEM/SMEM (no pipeline prologue for a
    # sub-microsecond problem).
    d_in, n_g, lanes = xt3.shape
    return pl.pallas_call(
        _mlp_kernel,
        out_shape=jax.ShapeDtypeStruct((n_g, lanes), out_dtype),
        in_specs=[
            pl.BlockSpec(memory_space=pltpu.MemorySpace.VMEM),   # x (feature-major)
            pl.BlockSpec(memory_space=pltpu.MemorySpace.SMEM),   # w1
            pl.BlockSpec(memory_space=pltpu.MemorySpace.SMEM),   # b1
            pl.BlockSpec(memory_space=pltpu.MemorySpace.SMEM),   # w2
            pl.BlockSpec(memory_space=pltpu.MemorySpace.SMEM),   # b2
        ],
        out_specs=pl.BlockSpec(memory_space=pltpu.MemorySpace.VMEM),
        cost_estimate=_cost_estimate(n_g * lanes, d_in, w1.shape[1]),
    )(xt3, w1, b1, w2, b2)


def _net_forward_batched(xt3, w1, b1, w2, b2, out_dtype, tile_g):
    d_in, n_g, lanes = xt3.shape
    grid = (pl.cdiv(n_g, tile_g),)   # ragged boundary block handled by Pallas masking
    return pl.pallas_call(
        _mlp_kernel,
        out_shape=jax.ShapeDtypeStruct((n_g, lanes), out_dtype),
        grid=grid,
        in_specs=[
            pl.BlockSpec((d_in, tile_g, lanes), lambda i: (0, i, 0)),   # x tiles
            pl.BlockSpec(memory_space=pltpu.MemorySpace.SMEM),          # w1 (resident)
            pl.BlockSpec(memory_space=pltpu.MemorySpace.SMEM),          # b1
            pl.BlockSpec(memory_space=pltpu.MemorySpace.SMEM),          # w2
            pl.BlockSpec(memory_space=pltpu.MemorySpace.SMEM),          # b2
        ],
        out_specs=pl.BlockSpec((tile_g, lanes), lambda i: (i, 0)),      # lane-dense
        compiler_params=pltpu.CompilerParams(
            dimension_semantics=("parallel",),          # megacore shards the batch grid
            vmem_limit_bytes=_VMEM_LIMIT_BYTES),
        cost_estimate=_cost_estimate(n_g * lanes, d_in, w1.shape[1]),
    )(xt3, w1, b1, w2, b2)


def net_forward(x, w1, b1, w2, b2):
    """Forward pass of Net.  x: (B, 10); w1: (10, 5); b1: (5,); w2: (5, 1); b2: (1,)."""
    B, d_in = x.shape
    d_hid = w1.shape[1]

    w1f = w1.astype(jnp.float32)
    b1f = b1.reshape(d_hid).astype(jnp.float32)
    w2f = w2.reshape(d_hid).astype(jnp.float32)
    b2f = b2.reshape(1).astype(jnp.float32)

    # Feature-major relayout: (B, 10) -> (10, n_g, 128).  Under jit the pad +
    # transpose (+ free reshape) fuse into a single pass over x.  Callers that
    # already keep activations feature-major avoid this copy entirely.
    b128 = _round_up(B, _LANES)
    xp = x if b128 == B else jnp.pad(x, ((0, b128 - B), (0, 0)))
    n_g = b128 // _LANES
    xt3 = jnp.transpose(xp.astype(jnp.float32)).reshape(d_in, n_g, _LANES)

    if B <= _SMALL_CUTOFF_ROWS:
        out = _net_forward_small(xt3, w1f, b1f, w2f, b2f, x.dtype)
    else:
        # Biggest tile that (a) fits comfortably in scoped VMEM on every
        # generation and (b) still leaves >= ~4 grid steps for megacore.
        tile_g = min(_MAX_TILE_GROUPS, max(8, _round_up(pl.cdiv(n_g, 4), 8)))
        out = _net_forward_batched(xt3, w1f, b1f, w2f, b2f, x.dtype, tile_g)

    return out.reshape(-1)[:B].reshape(B, 1)


def reference_forward(x, w1, b1, w2, b2):
    h = jnp.maximum(x @ w1 + b1, 0.0)
    return h @ w2 + b2


if __name__ == "__main__":
    key = jax.random.PRNGKey(0)
    k_x, k_w1, k_b1, k_w2, k_b2, k_xb = jax.random.split(key, 6)

    D_in, D_hid, D_out = 10, 5, 1
    w1 = jax.random.normal(k_w1, (D_in, D_hid), dtype=jnp.float32) * 0.1
    b1 = jax.random.normal(k_b1, (D_hid,), dtype=jnp.float32) * 0.1
    w2 = jax.random.normal(k_w2, (D_hid, D_out), dtype=jnp.float32) * 0.1
    b2 = jax.random.normal(k_b2, (D_out,), dtype=jnp.float32) * 0.1

    fwd = jax.jit(net_forward)

    # Small-batch (grid-free) path.
    B = 8
    x = jax.random.normal(k_x, (B, D_in), dtype=jnp.float32)
    out = jax.block_until_ready(fwd(x, w1, b1, w2, b2))
    ref = reference_forward(x, w1, b1, w2, b2)
    assert out.shape == (B, D_out)
    assert jnp.allclose(out, ref, atol=1e-5, rtol=1e-5)

    # Gridded path with a ragged batch (exercises Pallas boundary-block masking
    # and the megacore-parallel batch grid).
    B_big = 5000
    x_big = jax.random.normal(k_xb, (B_big, D_in), dtype=jnp.float32)
    out_big = jax.block_until_ready(fwd(x_big, w1, b1, w2, b2))
    ref_big = reference_forward(x_big, w1, b1, w2, b2)
    assert out_big.shape == (B_big, D_out)
    assert jnp.allclose(out_big, ref_big, atol=1e-5, rtol=1e-5)

    print("KERNEL_OK")
</pallas_src>

<mosaic_0001>
module attributes {stable_mosaic.version = 11 : i64} {
  func.func @_mlp_kernel(%arg0: memref<10x1x128xf32, #tpu.memory_space<vmem>>, %arg1: memref<10x5xf32, #tpu.memory_space<smem>>, %arg2: memref<5xf32, #tpu.memory_space<smem>>, %arg3: memref<5xf32, #tpu.memory_space<smem>>, %arg4: memref<1xf32, #tpu.memory_space<smem>>, %arg5: memref<1x128xf32, #tpu.memory_space<vmem>>) attributes {dimension_semantics = [], scalar_prefetch = 0 : i64, scratch_operands = 0 : i64, tpu.core_type = #tpu.core_type<tc>} {
    %c0 = arith.constant 0 : index
    %c0_0 = arith.constant 0 : index
    %c0_1 = arith.constant 0 : index
    %0 = vector.load %arg0[%c0, %c0_0, %c0_1] : memref<10x1x128xf32, #tpu.memory_space<vmem>>, vector<1x1x128xf32>
    %1 = vector.shape_cast %0 : vector<1x1x128xf32> to vector<1x128xf32>
    %c0_2 = arith.constant 0 : index
    %c0_3 = arith.constant 0 : index
    %2 = memref.load %arg1[%c0_2, %c0_3] : memref<10x5xf32, #tpu.memory_space<smem>>
    %3 = vector.broadcast %2 : f32 to vector<1x128xf32>
    %4 = arith.mulf %1, %3 : vector<1x128xf32>
    %c1 = arith.constant 1 : index
    %c0_4 = arith.constant 0 : index
    %c0_5 = arith.constant 0 : index
    %5 = vector.load %arg0[%c1, %c0_4, %c0_5] : memref<10x1x128xf32, #tpu.memory_space<vmem>>, vector<1x1x128xf32>
    %6 = vector.shape_cast %5 : vector<1x1x128xf32> to vector<1x128xf32>
    %c1_6 = arith.constant 1 : index
    %c0_7 = arith.constant 0 : index
    %7 = memref.load %arg1[%c1_6, %c0_7] : memref<10x5xf32, #tpu.memory_space<smem>>
    %8 = vector.broadcast %7 : f32 to vector<1x128xf32>
    %9 = arith.mulf %6, %8 : vector<1x128xf32>
    %10 = arith.addf %4, %9 : vector<1x128xf32>
    %c2 = arith.constant 2 : index
    %c0_8 = arith.constant 0 : index
    %c0_9 = arith.constant 0 : index
    %11 = vector.load %arg0[%c2, %c0_8, %c0_9] : memref<10x1x128xf32, #tpu.memory_space<vmem>>, vector<1x1x128xf32>
    %12 = vector.shape_cast %11 : vector<1x1x128xf32> to vector<1x128xf32>
    %c2_10 = arith.constant 2 : index
    %c0_11 = arith.constant 0 : index
    %13 = memref.load %arg1[%c2_10, %c0_11] : memref<10x5xf32, #tpu.memory_space<smem>>
    %14 = vector.broadcast %13 : f32 to vector<1x128xf32>
    %15 = arith.mulf %12, %14 : vector<1x128xf32>
    %16 = arith.addf %10, %15 : vector<1x128xf32>
    %c3 = arith.constant 3 : index
    %c0_12 = arith.constant 0 : index
    %c0_13 = arith.constant 0 : index
    %17 = vector.load %arg0[%c3, %c0_12, %c0_13] : memref<10x1x128xf32, #tpu.memory_space<vmem>>, vector<1x1x128xf32>
    %18 = vector.shape_cast %17 : vector<1x1x128xf32> to vector<1x128xf32>
    %c3_14 = arith.constant 3 : index
    %c0_15 = arith.constant 0 : index
    %19 = memref.load %arg1[%c3_14, %c0_15] : memref<10x5xf32, #tpu.memory_space<smem>>
    %20 = vector.broadcast %19 : f32 to vector<1x128xf32>
    %21 = arith.mulf %18, %20 : vector<1x128xf32>
    %22 = arith.addf %16, %21 : vector<1x128xf32>
    %c4 = arith.constant 4 : index
    %c0_16 = arith.constant 0 : index
    %c0_17 = arith.constant 0 : index
    %23 = vector.load %arg0[%c4, %c0_16, %c0_17] : memref<10x1x128xf32, #tpu.memory_space<vmem>>, vector<1x1x128xf32>
    %24 = vector.shape_cast %23 : vector<1x1x128xf32> to vector<1x128xf32>
    %c4_18 = arith.constant 4 : index
    %c0_19 = arith.constant 0 : index
    %25 = memref.load %arg1[%c4_18, %c0_19] : memref<10x5xf32, #tpu.memory_space<smem>>
    %26 = vector.broadcast %25 : f32 to vector<1x128xf32>
    %27 = arith.mulf %24, %26 : vector<1x128xf32>
    %28 = arith.addf %22, %27 : vector<1x128xf32>
    %c5 = arith.constant 5 : index
    %c0_20 = arith.constant 0 : index
    %c0_21 = arith.constant 0 : index
    %29 = vector.load %arg0[%c5, %c0_20, %c0_21] : memref<10x1x128xf32, #tpu.memory_space<vmem>>, vector<1x1x128xf32>
    %30 = vector.shape_cast %29 : vector<1x1x128xf32> to vector<1x128xf32>
    %c5_22 = arith.constant 5 : index
    %c0_23 = arith.constant 0 : index
    %31 = memref.load %arg1[%c5_22, %c0_23] : memref<10x5xf32, #tpu.memory_space<smem>>
    %32 = vector.broadcast %31 : f32 to vector<1x128xf32>
    %33 = arith.mulf %30, %32 : vector<1x128xf32>
    %34 = arith.addf %28, %33 : vector<1x128xf32>
    %c6 = arith.constant 6 : index
    %c0_24 = arith.constant 0 : index
    %c0_25 = arith.constant 0 : index
    %35 = vector.load %arg0[%c6, %c0_24, %c0_25] : memref<10x1x128xf32, #tpu.memory_space<vmem>>, vector<1x1x128xf32>
    %36 = vector.shape_cast %35 : vector<1x1x128xf32> to vector<1x128xf32>
    %c6_26 = arith.constant 6 : index
    %c0_27 = arith.constant 0 : index
    %37 = memref.load %arg1[%c6_26, %c0_27] : memref<10x5xf32, #tpu.memory_space<smem>>
    %38 = vector.broadcast %37 : f32 to vector<1x128xf32>
    %39 = arith.mulf %36, %38 : vector<1x128xf32>
    %40 = arith.addf %34, %39 : vector<1x128xf32>
    %c7 = arith.constant 7 : index
    %c0_28 = arith.constant 0 : index
    %c0_29 = arith.constant 0 : index
    %41 = vector.load %arg0[%c7, %c0_28, %c0_29] : memref<10x1x128xf32, #tpu.memory_space<vmem>>, vector<1x1x128xf32>
    %42 = vector.shape_cast %41 : vector<1x1x128xf32> to vector<1x128xf32>
    %c7_30 = arith.constant 7 : index
    %c0_31 = arith.constant 0 : index
    %43 = memref.load %arg1[%c7_30, %c0_31] : memref<10x5xf32, #tpu.memory_space<smem>>
    %44 = vector.broadcast %43 : f32 to vector<1x128xf32>
    %45 = arith.mulf %42, %44 : vector<1x128xf32>
    %46 = arith.addf %40, %45 : vector<1x128xf32>
    %c8 = arith.constant 8 : index
    %c0_32 = arith.constant 0 : index
    %c0_33 = arith.constant 0 : index
    %47 = vector.load %arg0[%c8, %c0_32, %c0_33] : memref<10x1x128xf32, #tpu.memory_space<vmem>>, vector<1x1x128xf32>
    %48 = vector.shape_cast %47 : vector<1x1x128xf32> to vector<1x128xf32>
    %c8_34 = arith.constant 8 : index
    %c0_35 = arith.constant 0 : index
    %49 = memref.load %arg1[%c8_34, %c0_35] : memref<10x5xf32, #tpu.memory_space<smem>>
    %50 = vector.broadcast %49 : f32 to vector<1x128xf32>
    %51 = arith.mulf %48, %50 : vector<1x128xf32>
    %52 = arith.addf %46, %51 : vector<1x128xf32>
    %c9 = arith.constant 9 : index
    %c0_36 = arith.constant 0 : index
    %c0_37 = arith.constant 0 : index
    %53 = vector.load %arg0[%c9, %c0_36, %c0_37] : memref<10x1x128xf32, #tpu.memory_space<vmem>>, vector<1x1x128xf32>
    %54 = vector.shape_cast %53 : vector<1x1x128xf32> to vector<1x128xf32>
    %c9_38 = arith.constant 9 : index
    %c0_39 = arith.constant 0 : index
    %55 = memref.load %arg1[%c9_38, %c0_39] : memref<10x5xf32, #tpu.memory_space<smem>>
    %56 = vector.broadcast %55 : f32 to vector<1x128xf32>
    %57 = arith.mulf %54, %56 : vector<1x128xf32>
    %58 = arith.addf %52, %57 : vector<1x128xf32>
    %c0_40 = arith.constant 0 : index
    %59 = memref.load %arg2[%c0_40] : memref<5xf32, #tpu.memory_space<smem>>
    %60 = vector.broadcast %59 : f32 to vector<1x128xf32>
    %61 = arith.addf %58, %60 : vector<1x128xf32>
    %cst = arith.constant 0.000000e+00 : f32
    %62 = vector.broadcast %cst : f32 to vector<1x128xf32>
    %63 = arith.maximumf %61, %62 : vector<1x128xf32>
    %c0_41 = arith.constant 0 : index
    %64 = memref.load %arg3[%c0_41] : memref<5xf32, #tpu.memory_space<smem>>
    %65 = vector.broadcast %64 : f32 to vector<1x128xf32>
    %66 = arith.mulf %63, %65 : vector<1x128xf32>
    %c0_42 = arith.constant 0 : index
    %c0_43 = arith.constant 0 : index
    %c0_44 = arith.constant 0 : index
    %67 = vector.load %arg0[%c0_42, %c0_43, %c0_44] : memref<10x1x128xf32, #tpu.memory_space<vmem>>, vector<1x1x128xf32>
    %68 = vector.shape_cast %67 : vector<1x1x128xf32> to vector<1x128xf32>
    %c0_45 = arith.constant 0 : index
    %c1_46 = arith.constant 1 : index
    %69 = memref.load %arg1[%c0_45, %c1_46] : memref<10x5xf32, #tpu.memory_space<smem>>
    %70 = vector.broadcast %69 : f32 to vector<1x128xf32>
    %71 = arith.mulf %68, %70 : vector<1x128xf32>
    %c1_47 = arith.constant 1 : index
    %c0_48 = arith.constant 0 : index
    %c0_49 = arith.constant 0 : index
    %72 = vector.load %arg0[%c1_47, %c0_48, %c0_49] : memref<10x1x128xf32, #tpu.memory_space<vmem>>, vector<1x1x128xf32>
    %73 = vector.shape_cast %72 : vector<1x1x128xf32> to vector<1x128xf32>
    %c1_50 = arith.constant 1 : index
    %c1_51 = arith.constant 1 : index
    %74 = memref.load %arg1[%c1_50, %c1_51] : memref<10x5xf32, #tpu.memory_space<smem>>
    %75 = vector.broadcast %74 : f32 to vector<1x128xf32>
    %76 = arith.mulf %73, %75 : vector<1x128xf32>
    %77 = arith.addf %71, %76 : vector<1x128xf32>
    %c2_52 = arith.constant 2 : index
    %c0_53 = arith.constant 0 : index
    %c0_54 = arith.constant 0 : index
    %78 = vector.load %arg0[%c2_52, %c0_53, %c0_54] : memref<10x1x128xf32, #tpu.memory_space<vmem>>, vector<1x1x128xf32>
    %79 = vector.shape_cast %78 : vector<1x1x128xf32> to vector<1x128xf32>
    %c2_55 = arith.constant 2 : index
    %c1_56 = arith.constant 1 : index
    %80 = memref.load %arg1[%c2_55, %c1_56] : memref<10x5xf32, #tpu.memory_space<smem>>
    %81 = vector.broadcast %80 : f32 to vector<1x128xf32>
    %82 = arith.mulf %79, %81 : vector<1x128xf32>
    %83 = arith.addf %77, %82 : vector<1x128xf32>
    %c3_57 = arith.constant 3 : index
    %c0_58 = arith.constant 0 : index
    %c0_59 = arith.constant 0 : index
    %84 = vector.load %arg0[%c3_57, %c0_58, %c0_59] : memref<10x1x128xf32, #tpu.memory_space<vmem>>, vector<1x1x128xf32>
    %85 = vector.shape_cast %84 : vector<1x1x128xf32> to vector<1x128xf32>
    %c3_60 = arith.constant 3 : index
    %c1_61 = arith.constant 1 : index
    %86 = memref.load %arg1[%c3_60, %c1_61] : memref<10x5xf32, #tpu.memory_space<smem>>
    %87 = vector.broadcast %86 : f32 to vector<1x128xf32>
    %88 = arith.mulf %85, %87 : vector<1x128xf32>
    %89 = arith.addf %83, %88 : vector<1x128xf32>
    %c4_62 = arith.constant 4 : index
    %c0_63 = arith.constant 0 : index
    %c0_64 = arith.constant 0 : index
    %90 = vector.load %arg0[%c4_62, %c0_63, %c0_64] : memref<10x1x128xf32, #tpu.memory_space<vmem>>, vector<1x1x128xf32>
    %91 = vector.shape_cast %90 : vector<1x1x128xf32> to vector<1x128xf32>
    %c4_65 = arith.constant 4 : index
    %c1_66 = arith.constant 1 : index
    %92 = memref.load %arg1[%c4_65, %c1_66] : memref<10x5xf32, #tpu.memory_space<smem>>
    %93 = vector.broadcast %92 : f32 to vector<1x128xf32>
    %94 = arith.mulf %91, %93 : vector<1x128xf32>
    %95 = arith.addf %89, %94 : vector<1x128xf32>
    %c5_67 = arith.constant 5 : index
    %c0_68 = arith.constant 0 : index
    %c0_69 = arith.constant 0 : index
    %96 = vector.load %arg0[%c5_67, %c0_68, %c0_69] : memref<10x1x128xf32, #tpu.memory_space<vmem>>, vector<1x1x128xf32>
    %97 = vector.shape_cast %96 : vector<1x1x128xf32> to vector<1x128xf32>
    %c5_70 = arith.constant 5 : index
    %c1_71 = arith.constant 1 : index
    %98 = memref.load %arg1[%c5_70, %c1_71] : memref<10x5xf32, #tpu.memory_space<smem>>
    %99 = vector.broadcast %98 : f32 to vector<1x128xf32>
    %100 = arith.mulf %97, %99 : vector<1x128xf32>
    %101 = arith.addf %95, %100 : vector<1x128xf32>
    %c6_72 = arith.constant 6 : index
    %c0_73 = arith.constant 0 : index
    %c0_74 = arith.constant 0 : index
    %102 = vector.load %arg0[%c6_72, %c0_73, %c0_74] : memref<10x1x128xf32, #tpu.memory_space<vmem>>, vector<1x1x128xf32>
    %103 = vector.shape_cast %102 : vector<1x1x128xf32> to vector<1x128xf32>
    %c6_75 = arith.constant 6 : index
    %c1_76 = arith.constant 1 : index
    %104 = memref.load %arg1[%c6_75, %c1_76] : memref<10x5xf32, #tpu.memory_space<smem>>
    %105 = vector.broadcast %104 : f32 to vector<1x128xf32>
    %106 = arith.mulf %103, %105 : vector<1x128xf32>
    %107 = arith.addf %101, %106 : vector<1x128xf32>
    %c7_77 = arith.constant 7 : index
    %c0_78 = arith.constant 0 : index
    %c0_79 = arith.constant 0 : index
    %108 = vector.load %arg0[%c7_77, %c0_78, %c0_79] : memref<10x1x128xf32, #tpu.memory_space<vmem>>, vector<1x1x128xf32>
    %109 = vector.shape_cast %108 : vector<1x1x128xf32> to vector<1x128xf32>
    %c7_80 = arith.constant 7 : index
    %c1_81 = arith.constant 1 : index
    %110 = memref.load %arg1[%c7_80, %c1_81] : memref<10x5xf32, #tpu.memory_space<smem>>
    %111 = vector.broadcast %110 : f32 to vector<1x128xf32>
    %112 = arith.mulf %109, %111 : vector<1x128xf32>
    %113 = arith.addf %107, %112 : vector<1x128xf32>
    %c8_82 = arith.constant 8 : index
    %c0_83 = arith.constant 0 : index
    %c0_84 = arith.constant 0 : index
    %114 = vector.load %arg0[%c8_82, %c0_83, %c0_84] : memref<10x1x128xf32, #tpu.memory_space<vmem>>, vector<1x1x128xf32>
    %115 = vector.shape_cast %114 : vector<1x1x128xf32> to vector<1x128xf32>
    %c8_85 = arith.constant 8 : index
    %c1_86 = arith.constant 1 : index
    %116 = memref.load %arg1[%c8_85, %c1_86] : memref<10x5xf32, #tpu.memory_space<smem>>
    %117 = vector.broadcast %116 : f32 to vector<1x128xf32>
    %118 = arith.mulf %115, %117 : vector<1x128xf32>
    %119 = arith.addf %113, %118 : vector<1x128xf32>
    %c9_87 = arith.constant 9 : index
    %c0_88 = arith.constant 0 : index
    %c0_89 = arith.constant 0 : index
    %120 = vector.load %arg0[%c9_87, %c0_88, %c0_89] : memref<10x1x128xf32, #tpu.memory_space<vmem>>, vector<1x1x128xf32>
    %121 = vector.shape_cast %120 : vector<1x1x128xf32> to vector<1x128xf32>
    %c9_90 = arith.constant 9 : index
    %c1_91 = arith.constant 1 : index
    %122 = memref.load %arg1[%c9_90, %c1_91] : memref<10x5xf32, #tpu.memory_space<smem>>
    %123 = vector.broadcast %122 : f32 to vector<1x128xf32>
    %124 = arith.mulf %121, %123 : vector<1x128xf32>
    %125 = arith.addf %119, %124 : vector<1x128xf32>
    %c1_92 = arith.constant 1 : index
    %126 = memref.load %arg2[%c1_92] : memref<5xf32, #tpu.memory_space<smem>>
    %127 = vector.broadcast %126 : f32 to vector<1x128xf32>
    %128 = arith.addf %125, %127 : vector<1x128xf32>
    %cst_93 = arith.constant 0.000000e+00 : f32
    %129 = vector.broadcast %cst_93 : f32 to vector<1x128xf32>
    %130 = arith.maximumf %128, %129 : vector<1x128xf32>
    %c1_94 = arith.constant 1 : index
    %131 = memref.load %arg3[%c1_94] : memref<5xf32, #tpu.memory_space<smem>>
    %132 = vector.broadcast %131 : f32 to vector<1x128xf32>
    %133 = arith.mulf %130, %132 : vector<1x128xf32>
    %134 = arith.addf %66, %133 : vector<1x128xf32>
    %c0_95 = arith.constant 0 : index
    %c0_96 = arith.constant 0 : index
    %c0_97 = arith.constant 0 : index
    %135 = vector.load %arg0[%c0_95, %c0_96, %c0_97] : memref<10x1x128xf32, #tpu.memory_space<vmem>>, vector<1x1x128xf32>
    %136 = vector.shape_cast %135 : vector<1x1x128xf32> to vector<1x128xf32>
    %c0_98 = arith.constant 0 : index
    %c2_99 = arith.constant 2 : index
    %137 = memref.load %arg1[%c0_98, %c2_99] : memref<10x5xf32, #tpu.memory_space<smem>>
    %138 = vector.broadcast %137 : f32 to vector<1x128xf32>
    %139 = arith.mulf %136, %138 : vector<1x128xf32>
    %c1_100 = arith.constant 1 : index
    %c0_101 = arith.constant 0 : index
    %c0_102 = arith.constant 0 : index
    %140 = vector.load %arg0[%c1_100, %c0_101, %c0_102] : memref<10x1x128xf32, #tpu.memory_space<vmem>>, vector<1x1x128xf32>
    %141 = vector.shape_cast %140 : vector<1x1x128xf32> to vector<1x128xf32>
    %c1_103 = arith.constant 1 : index
    %c2_104 = arith.constant 2 : index
    %142 = memref.load %arg1[%c1_103, %c2_104] : memref<10x5xf32, #tpu.memory_space<smem>>
    %143 = vector.broadcast %142 : f32 to vector<1x128xf32>
    %144 = arith.mulf %141, %143 : vector<1x128xf32>
    %145 = arith.addf %139, %144 : vector<1x128xf32>
    %c2_105 = arith.constant 2 : index
    %c0_106 = arith.constant 0 : index
    %c0_107 = arith.constant 0 : index
    %146 = vector.load %arg0[%c2_105, %c0_106, %c0_107] : memref<10x1x128xf32, #tpu.memory_space<vmem>>, vector<1x1x128xf32>
    %147 = vector.shape_cast %146 : vector<1x1x128xf32> to vector<1x128xf32>
    %c2_108 = arith.constant 2 : index
    %c2_109 = arith.constant 2 : index
    %148 = memref.load %arg1[%c2_108, %c2_109] : memref<10x5xf32, #tpu.memory_space<smem>>
    %149 = vector.broadcast %148 : f32 to vector<1x128xf32>
    %150 = arith.mulf %147, %149 : vector<1x128xf32>
    %151 = arith.addf %145, %150 : vector<1x128xf32>
    %c3_110 = arith.constant 3 : index
    %c0_111 = arith.constant 0 : index
    %c0_112 = arith.constant 0 : index
    %152 = vector.load %arg0[%c3_110, %c0_111, %c0_112] : memref<10x1x128xf32, #tpu.memory_space<vmem>>, vector<1x1x128xf32>
    %153 = vector.shape_cast %152 : vector<1x1x128xf32> to vector<1x128xf32>
    %c3_113 = arith.constant 3 : index
    %c2_114 = arith.constant 2 : index
    %154 = memref.load %arg1[%c3_113, %c2_114] : memref<10x5xf32, #tpu.memory_space<smem>>
    %155 = vector.broadcast %154 : f32 to vector<1x128xf32>
    %156 = arith.mulf %153, %155 : vector<1x128xf32>
    %157 = arith.addf %151, %156 : vector<1x128xf32>
    %c4_115 = arith.constant 4 : index
    %c0_116 = arith.constant 0 : index
    %c0_117 = arith.constant 0 : index
    %158 = vector.load %arg0[%c4_115, %c0_116, %c0_117] : memref<10x1x128xf32, #tpu.memory_space<vmem>>, vector<1x1x128xf32>
    %159 = vector.shape_cast %158 : vector<1x1x128xf32> to vector<1x128xf32>
    %c4_118 = arith.constant 4 : index
    %c2_119 = arith.constant 2 : index
    %160 = memref.load %arg1[%c4_118, %c2_119] : memref<10x5xf32, #tpu.memory_space<smem>>
    %161 = vector.broadcast %160 : f32 to vector<1x128xf32>
    %162 = arith.mulf %159, %161 : vector<1x128xf32>
    %163 = arith.addf %157, %162 : vector<1x128xf32>
    %c5_120 = arith.constant 5 : index
    %c0_121 = arith.constant 0 : index
    %c0_122 = arith.constant 0 : index
    %164 = vector.load %arg0[%c5_120, %c0_121, %c0_122] : memref<10x1x128xf32, #tpu.memory_space<vmem>>, vector<1x1x128xf32>
    %165 = vector.shape_cast %164 : vector<1x1x128xf32> to vector<1x128xf32>
    %c5_123 = arith.constant 5 : index
    %c2_124 = arith.constant 2 : index
    %166 = memref.load %arg1[%c5_123, %c2_124] : memref<10x5xf32, #tpu.memory_space<smem>>
    %167 = vector.broadcast %166 : f32 to vector<1x128xf32>
    %168 = arith.mulf %165, %167 : vector<1x128xf32>
    %169 = arith.addf %163, %168 : vector<1x128xf32>
    %c6_125 = arith.constant 6 : index
    %c0_126 = arith.constant 0 : index
    %c0_127 = arith.constant 0 : index
    %170 = vector.load %arg0[%c6_125, %c0_126, %c0_127] : memref<10x1x128xf32, #tpu.memory_space<vmem>>, vector<1x1x128xf32>
    %171 = vector.shape_cast %170 : vector<1x1x128xf32> to vector<1x128xf32>
    %c6_128 = arith.constant 6 : index
    %c2_129 = arith.constant 2 : index
    %172 = memref.load %arg1[%c6_128, %c2_129] : memref<10x5xf32, #tpu.memory_space<smem>>
    %173 = vector.broadcast %172 : f32 to vector<1x128xf32>
    %174 = arith.mulf %171, %173 : vector<1x128xf32>
    %175 = arith.addf %169, %174 : vector<1x128xf32>
    %c7_130 = arith.constant 7 : index
    %c0_131 = arith.constant 0 : index
    %c0_132 = arith.constant 0 : index
    %176 = vector.load %arg0[%c7_130, %c0_131, %c0_132] : memref<10x1x128xf32, #tpu.memory_space<vmem>>, vector<1x1x128xf32>
    %177 = vector.shape_cast %176 : vector<1x1x128xf32> to vector<1x128xf32>
    %c7_133 = arith.constant 7 : index
    %c2_134 = arith.constant 2 : index
    %178 = memref.load %arg1[%c7_133, %c2_134] : memref<10x5xf32, #tpu.memory_space<smem>>
    %179 = vector.broadcast %178 : f32 to vector<1x128xf32>
    %180 = arith.mulf %177, %179 : vector<1x128xf32>
    %181 = arith.addf %175, %180 : vector<1x128xf32>
    %c8_135 = arith.constant 8 : index
    %c0_136 = arith.constant 0 : index
    %c0_137 = arith.constant 0 : index
    %182 = vector.load %arg0[%c8_135, %c0_136, %c0_137] : memref<10x1x128xf32, #tpu.memory_space<vmem>>, vector<1x1x128xf32>
    %183 = vector.shape_cast %182 : vector<1x1x128xf32> to vector<1x128xf32>
    %c8_138 = arith.constant 8 : index
    %c2_139 = arith.constant 2 : index
    %184 = memref.load %arg1[%c8_138, %c2_139] : memref<10x5xf32, #tpu.memory_space<smem>>
    %185 = vector.broadcast %184 : f32 to vector<1x128xf32>
    %186 = arith.mulf %183, %185 : vector<1x128xf32>
    %187 = arith.addf %181, %186 : vector<1x128xf32>
    %c9_140 = arith.constant 9 : index
    %c0_141 = arith.constant 0 : index
    %c0_142 = arith.constant 0 : index
    %188 = vector.load %arg0[%c9_140, %c0_141, %c0_142] : memref<10x1x128xf32, #tpu.memory_space<vmem>>, vector<1x1x128xf32>
    %189 = vector.shape_cast %188 : vector<1x1x128xf32> to vector<1x128xf32>
    %c9_143 = arith.constant 9 : index
    %c2_144 = arith.constant 2 : index
    %190 = memref.load %arg1[%c9_143, %c2_144] : memref<10x5xf32, #tpu.memory_space<smem>>
    %191 = vector.broadcast %190 : f32 to vector<1x128xf32>
    %192 = arith.mulf %189, %191 : vector<1x128xf32>
    %193 = arith.addf %187, %192 : vector<1x128xf32>
    %c2_145 = arith.constant 2 : index
    %194 = memref.load %arg2[%c2_145] : memref<5xf32, #tpu.memory_space<smem>>
    %195 = vector.broadcast %194 : f32 to vector<1x128xf32>
    %196 = arith.addf %193, %195 : vector<1x128xf32>
    %cst_146 = arith.constant 0.000000e+00 : f32
    %197 = vector.broadcast %cst_146 : f32 to vector<1x128xf32>
    %198 = arith.maximumf %196, %197 : vector<1x128xf32>
    %c2_147 = arith.constant 2 : index
    %199 = memref.load %arg3[%c2_147] : memref<5xf32, #tpu.memory_space<smem>>
    %200 = vector.broadcast %199 : f32 to vector<1x128xf32>
    %201 = arith.mulf %198, %200 : vector<1x128xf32>
    %202 = arith.addf %134, %201 : vector<1x128xf32>
    %c0_148 = arith.constant 0 : index
    %c0_149 = arith.constant 0 : index
    %c0_150 = arith.constant 0 : index
    %203 = vector.load %arg0[%c0_148, %c0_149, %c0_150] : memref<10x1x128xf32, #tpu.memory_space<vmem>>, vector<1x1x128xf32>
    %204 = vector.shape_cast %203 : vector<1x1x128xf32> to vector<1x128xf32>
    %c0_151 = arith.constant 0 : index
    %c3_152 = arith.constant 3 : index
    %205 = memref.load %arg1[%c0_151, %c3_152] : memref<10x5xf32, #tpu.memory_space<smem>>
    %206 = vector.broadcast %205 : f32 to vector<1x128xf32>
    %207 = arith.mulf %204, %206 : vector<1x128xf32>
    %c1_153 = arith.constant 1 : index
    %c0_154 = arith.constant 0 : index
    %c0_155 = arith.constant 0 : index
    %208 = vector.load %arg0[%c1_153, %c0_154, %c0_155] : memref<10x1x128xf32, #tpu.memory_space<vmem>>, vector<1x1x128xf32>
    %209 = vector.shape_cast %208 : vector<1x1x128xf32> to vector<1x128xf32>
    %c1_156 = arith.constant 1 : index
    %c3_157 = arith.constant 3 : index
    %210 = memref.load %arg1[%c1_156, %c3_157] : memref<10x5xf32, #tpu.memory_space<smem>>
    %211 = vector.broadcast %210 : f32 to vector<1x128xf32>
    %212 = arith.mulf %209, %211 : vector<1x128xf32>
    %213 = arith.addf %207, %212 : vector<1x128xf32>
    %c2_158 = arith.constant 2 : index
    %c0_159 = arith.constant 0 : index
    %c0_160 = arith.constant 0 : index
    %214 = vector.load %arg0[%c2_158, %c0_159, %c0_160] : memref<10x1x128xf32, #tpu.memory_space<vmem>>, vector<1x1x128xf32>
    %215 = vector.shape_cast %214 : vector<1x1x128xf32> to vector<1x128xf32>
    %c2_161 = arith.constant 2 : index
    %c3_162 = arith.constant 3 : index
    %216 = memref.load %arg1[%c2_161, %c3_162] : memref<10x5xf32, #tpu.memory_space<smem>>
    %217 = vector.broadcast %216 : f32 to vector<1x128xf32>
    %218 = arith.mulf %215, %217 : vector<1x128xf32>
    %219 = arith.addf %213, %218 : vector<1x128xf32>
    %c3_163 = arith.constant 3 : index
    %c0_164 = arith.constant 0 : index
    %c0_165 = arith.constant 0 : index
    %220 = vector.load %arg0[%c3_163, %c0_164, %c0_165] : memref<10x1x128xf32, #tpu.memory_space<vmem>>, vector<1x1x128xf32>
    %221 = vector.shape_cast %220 : vector<1x1x128xf32> to vector<1x128xf32>
    %c3_166 = arith.constant 3 : index
    %c3_167 = arith.constant 3 : index
    %222 = memref.load %arg1[%c3_166, %c3_167] : memref<10x5xf32, #tpu.memory_space<smem>>
    %223 = vector.broadcast %222 : f32 to vector<1x128xf32>
    %224 = arith.mulf %221, %223 : vector<1x128xf32>
    %225 = arith.addf %219, %224 : vector<1x128xf32>
    %c4_168 = arith.constant 4 : index
    %c0_169 = arith.constant 0 : index
    %c0_170 = arith.constant 0 : index
    %226 = vector.load %arg0[%c4_168, %c0_169, %c0_170] : memref<10x1x128xf32, #tpu.memory_space<vmem>>, vector<1x1x128xf32>
    %227 = vector.shape_cast %226 : vector<1x1x128xf32> to vector<1x128xf32>
    %c4_171 = arith.constant 4 : index
    %c3_172 = arith.constant 3 : index
    %228 = memref.load %arg1[%c4_171, %c3_172] : memref<10x5xf32, #tpu.memory_space<smem>>
    %229 = vector.broadcast %228 : f32 to vector<1x128xf32>
    %230 = arith.mulf %227, %229 : vector<1x128xf32>
    %231 = arith.addf %225, %230 : vector<1x128xf32>
    %c5_173 = arith.constant 5 : index
    %c0_174 = arith.constant 0 : index
    %c0_175 = arith.constant 0 : index
    %232 = vector.load %arg0[%c5_173, %c0_174, %c0_175] : memref<10x1x128xf32, #tpu.memory_space<vmem>>, vector<1x1x128xf32>
    %233 = vector.shape_cast %232 : vector<1x1x128xf32> to vector<1x128xf32>
    %c5_176 = arith.constant 5 : index
    %c3_177 = arith.constant 3 : index
    %234 = memref.load %arg1[%c5_176, %c3_177] : memref<10x5xf32, #tpu.memory_space<smem>>
    %235 = vector.broadcast %234 : f32 to vector<1x128xf32>
    %236 = arith.mulf %233, %235 : vector<1x128xf32>
    %237 = arith.addf %231, %236 : vector<1x128xf32>
    %c6_178 = arith.constant 6 : index
    %c0_179 = arith.constant 0 : index
    %c0_180 = arith.constant 0 : index
    %238 = vector.load %arg0[%c6_178, %c0_179, %c0_180] : memref<10x1x128xf32, #tpu.memory_space<vmem>>, vector<1x1x128xf32>
    %239 = vector.shape_cast %238 : vector<1x1x128xf32> to vector<1x128xf32>
    %c6_181 = arith.constant 6 : index
    %c3_182 = arith.constant 3 : index
    %240 = memref.load %arg1[%c6_181, %c3_182] : memref<10x5xf32, #tpu.memory_space<smem>>
    %241 = vector.broadcast %240 : f32 to vector<1x128xf32>
    %242 = arith.mulf %239, %241 : vector<1x128xf32>
    %243 = arith.addf %237, %242 : vector<1x128xf32>
    %c7_183 = arith.constant 7 : index
    %c0_184 = arith.constant 0 : index
    %c0_185 = arith.constant 0 : index
    %244 = vector.load %arg0[%c7_183, %c0_184, %c0_185] : memref<10x1x128xf32, #tpu.memory_space<vmem>>, vector<1x1x128xf32>
    %245 = vector.shape_cast %244 : vector<1x1x128xf32> to vector<1x128xf32>
    %c7_186 = arith.constant 7 : index
    %c3_187 = arith.constant 3 : index
    %246 = memref.load %arg1[%c7_186, %c3_187] : memref<10x5xf32, #tpu.memory_space<smem>>
    %247 = vector.broadcast %246 : f32 to vector<1x128xf32>
    %248 = arith.mulf %245, %247 : vector<1x128xf32>
    %249 = arith.addf %243, %248 : vector<1x128xf32>
    %c8_188 = arith.constant 8 : index
    %c0_189 = arith.constant 0 : index
    %c0_190 = arith.constant 0 : index
    %250 = vector.load %arg0[%c8_188, %c0_189, %c0_190] : memref<10x1x128xf32, #tpu.memory_space<vmem>>, vector<1x1x128xf32>
    %251 = vector.shape_cast %250 : vector<1x1x128xf32> to vector<1x128xf32>
    %c8_191 = arith.constant 8 : index
    %c3_192 = arith.constant 3 : index
    %252 = memref.load %arg1[%c8_191, %c3_192] : memref<10x5xf32, #tpu.memory_space<smem>>
    %253 = vector.broadcast %252 : f32 to vector<1x128xf32>
    %254 = arith.mulf %251, %253 : vector<1x128xf32>
    %255 = arith.addf %249, %254 : vector<1x128xf32>
    %c9_193 = arith.constant 9 : index
    %c0_194 = arith.constant 0 : index
    %c0_195 = arith.constant 0 : index
    %256 = vector.load %arg0[%c9_193, %c0_194, %c0_195] : memref<10x1x128xf32, #tpu.memory_space<vmem>>, vector<1x1x128xf32>
    %257 = vector.shape_cast %256 : vector<1x1x128xf32> to vector<1x128xf32>
    %c9_196 = arith.constant 9 : index
    %c3_197 = arith.constant 3 : index
    %258 = memref.load %arg1[%c9_196, %c3_197] : memref<10x5xf32, #tpu.memory_space<smem>>
    %259 = vector.broadcast %258 : f32 to vector<1x128xf32>
    %260 = arith.mulf %257, %259 : vector<1x128xf32>
    %261 = arith.addf %255, %260 : vector<1x128xf32>
    %c3_198 = arith.constant 3 : index
    %262 = memref.load %arg2[%c3_198] : memref<5xf32, #tpu.memory_space<smem>>
    %263 = vector.broadcast %262 : f32 to vector<1x128xf32>
    %264 = arith.addf %261, %263 : vector<1x128xf32>
    %cst_199 = arith.constant 0.000000e+00 : f32
    %265 = vector.broadcast %cst_199 : f32 to vector<1x128xf32>
    %266 = arith.maximumf %264, %265 : vector<1x128xf32>
    %c3_200 = arith.constant 3 : index
    %267 = memref.load %arg3[%c3_200] : memref<5xf32, #tpu.memory_space<smem>>
    %268 = vector.broadcast %267 : f32 to vector<1x128xf32>
    %269 = arith.mulf %266, %268 : vector<1x128xf32>
    %270 = arith.addf %202, %269 : vector<1x128xf32>
    %c0_201 = arith.constant 0 : index
    %c0_202 = arith.constant 0 : index
    %c0_203 = arith.constant 0 : index
    %271 = vector.load %arg0[%c0_201, %c0_202, %c0_203] : memref<10x1x128xf32, #tpu.memory_space<vmem>>, vector<1x1x128xf32>
    %272 = vector.shape_cast %271 : vector<1x1x128xf32> to vector<1x128xf32>
    %c0_204 = arith.constant 0 : index
    %c4_205 = arith.constant 4 : index
    %273 = memref.load %arg1[%c0_204, %c4_205] : memref<10x5xf32, #tpu.memory_space<smem>>
    %274 = vector.broadcast %273 : f32 to vector<1x128xf32>
    %275 = arith.mulf %272, %274 : vector<1x128xf32>
    %c1_206 = arith.constant 1 : index
    %c0_207 = arith.constant 0 : index
    %c0_208 = arith.constant 0 : index
    %276 = vector.load %arg0[%c1_206, %c0_207, %c0_208] : memref<10x1x128xf32, #tpu.memory_space<vmem>>, vector<1x1x128xf32>
    %277 = vector.shape_cast %276 : vector<1x1x128xf32> to vector<1x128xf32>
    %c1_209 = arith.constant 1 : index
    %c4_210 = arith.constant 4 : index
    %278 = memref.load %arg1[%c1_209, %c4_210] : memref<10x5xf32, #tpu.memory_space<smem>>
    %279 = vector.broadcast %278 : f32 to vector<1x128xf32>
    %280 = arith.mulf %277, %279 : vector<1x128xf32>
    %281 = arith.addf %275, %280 : vector<1x128xf32>
    %c2_211 = arith.constant 2 : index
    %c0_212 = arith.constant 0 : index
    %c0_213 = arith.constant 0 : index
    %282 = vector.load %arg0[%c2_211, %c0_212, %c0_213] : memref<10x1x128xf32, #tpu.memory_space<vmem>>, vector<1x1x128xf32>
    %283 = vector.shape_cast %282 : vector<1x1x128xf32> to vector<1x128xf32>
    %c2_214 = arith.constant 2 : index
    %c4_215 = arith.constant 4 : index
    %284 = memref.load %arg1[%c2_214, %c4_215] : memref<10x5xf32, #tpu.memory_space<smem>>
    %285 = vector.broadcast %284 : f32 to vector<1x128xf32>
    %286 = arith.mulf %283, %285 : vector<1x128xf32>
    %287 = arith.addf %281, %286 : vector<1x128xf32>
    %c3_216 = arith.constant 3 : index
    %c0_217 = arith.constant 0 : index
    %c0_218 = arith.constant 0 : index
    %288 = vector.load %arg0[%c3_216, %c0_217, %c0_218] : memref<10x1x128xf32, #tpu.memory_space<vmem>>, vector<1x1x128xf32>
    %289 = vector.shape_cast %288 : vector<1x1x128xf32> to vector<1x128xf32>
    %c3_219 = arith.constant 3 : index
    %c4_220 = arith.constant 4 : index
    %290 = memref.load %arg1[%c3_219, %c4_220] : memref<10x5xf32, #tpu.memory_space<smem>>
    %291 = vector.broadcast %290 : f32 to vector<1x128xf32>
    %292 = arith.mulf %289, %291 : vector<1x128xf32>
    %293 = arith.addf %287, %292 : vector<1x128xf32>
    %c4_221 = arith.constant 4 : index
    %c0_222 = arith.constant 0 : index
    %c0_223 = arith.constant 0 : index
    %294 = vector.load %arg0[%c4_221, %c0_222, %c0_223] : memref<10x1x128xf32, #tpu.memory_space<vmem>>, vector<1x1x128xf32>
    %295 = vector.shape_cast %294 : vector<1x1x128xf32> to vector<1x128xf32>
    %c4_224 = arith.constant 4 : index
    %c4_225 = arith.constant 4 : index
    %296 = memref.load %arg1[%c4_224, %c4_225] : memref<10x5xf32, #tpu.memory_space<smem>>
    %297 = vector.broadcast %296 : f32 to vector<1x128xf32>
    %298 = arith.mulf %295, %297 : vector<1x128xf32>
    %299 = arith.addf %293, %298 : vector<1x128xf32>
    %c5_226 = arith.constant 5 : index
    %c0_227 = arith.constant 0 : index
    %c0_228 = arith.constant 0 : index
    %300 = vector.load %arg0[%c5_226, %c0_227, %c0_228] : memref<10x1x128xf32, #tpu.memory_space<vmem>>, vector<1x1x128xf32>
    %301 = vector.shape_cast %300 : vector<1x1x128xf32> to vector<1x128xf32>
    %c5_229 = arith.constant 5 : index
    %c4_230 = arith.constant 4 : index
    %302 = memref.load %arg1[%c5_229, %c4_230] : memref<10x5xf32, #tpu.memory_space<smem>>
    %303 = vector.broadcast %302 : f32 to vector<1x128xf32>
    %304 = arith.mulf %301, %303 : vector<1x128xf32>
    %305 = arith.addf %299, %304 : vector<1x128xf32>
    %c6_231 = arith.constant 6 : index
    %c0_232 = arith.constant 0 : index
    %c0_233 = arith.constant 0 : index
    %306 = vector.load %arg0[%c6_231, %c0_232, %c0_233] : memref<10x1x128xf32, #tpu.memory_space<vmem>>, vector<1x1x128xf32>
    %307 = vector.shape_cast %306 : vector<1x1x128xf32> to vector<1x128xf32>
    %c6_234 = arith.constant 6 : index
    %c4_235 = arith.constant 4 : index
    %308 = memref.load %arg1[%c6_234, %c4_235] : memref<10x5xf32, #tpu.memory_space<smem>>
    %309 = vector.broadcast %308 : f32 to vector<1x128xf32>
    %310 = arith.mulf %307, %309 : vector<1x128xf32>
    %311 = arith.addf %305, %310 : vector<1x128xf32>
    %c7_236 = arith.constant 7 : index
    %c0_237 = arith.constant 0 : index
    %c0_238 = arith.constant 0 : index
    %312 = vector.load %arg0[%c7_236, %c0_237, %c0_238] : memref<10x1x128xf32, #tpu.memory_space<vmem>>, vector<1x1x128xf32>
    %313 = vector.shape_cast %312 : vector<1x1x128xf32> to vector<1x128xf32>
    %c7_239 = arith.constant 7 : index
    %c4_240 = arith.constant 4 : index
    %314 = memref.load %arg1[%c7_239, %c4_240] : memref<10x5xf32, #tpu.memory_space<smem>>
    %315 = vector.broadcast %314 : f32 to vector<1x128xf32>
    %316 = arith.mulf %313, %315 : vector<1x128xf32>
    %317 = arith.addf %311, %316 : vector<1x128xf32>
    %c8_241 = arith.constant 8 : index
    %c0_242 = arith.constant 0 : index
    %c0_243 = arith.constant 0 : index
    %318 = vector.load %arg0[%c8_241, %c0_242, %c0_243] : memref<10x1x128xf32, #tpu.memory_space<vmem>>, vector<1x1x128xf32>
    %319 = vector.shape_cast %318 : vector<1x1x128xf32> to vector<1x128xf32>
    %c8_244 = arith.constant 8 : index
    %c4_245 = arith.constant 4 : index
    %320 = memref.load %arg1[%c8_244, %c4_245] : memref<10x5xf32, #tpu.memory_space<smem>>
    %321 = vector.broadcast %320 : f32 to vector<1x128xf32>
    %322 = arith.mulf %319, %321 : vector<1x128xf32>
    %323 = arith.addf %317, %322 : vector<1x128xf32>
    %c9_246 = arith.constant 9 : index
    %c0_247 = arith.constant 0 : index
    %c0_248 = arith.constant 0 : index
    %324 = vector.load %arg0[%c9_246, %c0_247, %c0_248] : memref<10x1x128xf32, #tpu.memory_space<vmem>>, vector<1x1x128xf32>
    %325 = vector.shape_cast %324 : vector<1x1x128xf32> to vector<1x128xf32>
    %c9_249 = arith.constant 9 : index
    %c4_250 = arith.constant 4 : index
    %326 = memref.load %arg1[%c9_249, %c4_250] : memref<10x5xf32, #tpu.memory_space<smem>>
    %327 = vector.broadcast %326 : f32 to vector<1x128xf32>
    %328 = arith.mulf %325, %327 : vector<1x128xf32>
    %329 = arith.addf %323, %328 : vector<1x128xf32>
    %c4_251 = arith.constant 4 : index
    %330 = memref.load %arg2[%c4_251] : memref<5xf32, #tpu.memory_space<smem>>
    %331 = vector.broadcast %330 : f32 to vector<1x128xf32>
    %332 = arith.addf %329, %331 : vector<1x128xf32>
    %cst_252 = arith.constant 0.000000e+00 : f32
    %333 = vector.broadcast %cst_252 : f32 to vector<1x128xf32>
    %334 = arith.maximumf %332, %333 : vector<1x128xf32>
    %c4_253 = arith.constant 4 : index
    %335 = memref.load %arg3[%c4_253] : memref<5xf32, #tpu.memory_space<smem>>
    %336 = vector.broadcast %335 : f32 to vector<1x128xf32>
    %337 = arith.mulf %334, %336 : vector<1x128xf32>
    %338 = arith.addf %270, %337 : vector<1x128xf32>
    %c0_254 = arith.constant 0 : index
    %339 = memref.load %arg4[%c0_254] : memref<1xf32, #tpu.memory_space<smem>>
    %340 = vector.broadcast %339 : f32 to vector<1x128xf32>
    %341 = arith.addf %338, %340 : vector<1x128xf32>
    %c0_255 = arith.constant 0 : index
    %c0_256 = arith.constant 0 : index
    %342 = vector.load %arg5[%c0_255, %c0_256] : memref<1x128xf32, #tpu.memory_space<vmem>>, vector<1x128xf32>
    tpu.vector_store %arg5[%c0_255, %c0_256], %341 {strides = array<i32>} : memref<1x128xf32, #tpu.memory_space<vmem>>, vector<1x128xf32>,
    return
  }
}

</mosaic_0001>

<bundles_post_ra>
// kernel: net_forward.1
= control target key start
LH: loop header
LB: loop body
LE: loop exit
PB: predicated region body
PF: predicated region fallthrough
CT: control target
= control target key end

     0   :  { %11 = vsyncpa [#allocation4], 0  ;;  %s706_s0 = inlined_call_operand.vmem [shape: f32[10,1,128], index: 0, kind: input, shape index: {}]   ;;  %s707_s1 = inlined_call_operand.vmem [shape: f32[10,5], index: 1, kind: input, shape index: {}]   ;;  %s708_s2 = inlined_call_operand.vmem [shape: f32[5], index: 2, kind: input, shape index: {}]   ;;  %s709_s3 = inlined_call_operand.vmem [shape: f32[5], index: 3, kind: input, shape index: {}]   ;;  %s710_s4 = inlined_call_operand.<no memory space> [shape: f32[1], index: 4, kind: input, shape index: {}]   ;;  %s711_s5 = inlined_call_operand.vmem [shape: f32[1,128], index: 5, kind: output, shape index: {}]  }
   0x1   :  { %12 = vsyncpa [#allocation6], 0  ;;  %s31_s20 = sshll.u32 %s708_s2, 4  ;;  %s19_s23 = sshll.u32 %s707_s1, 4  ;;  %s32_s20 = int_to_ptr.vmem [resolvable:$true] %s31_s20  ;;  %s20_s23 = int_to_ptr.vmem [resolvable:$true] %s19_s23 }
   0x2   :  { %s433_s24 = smov [#allocation5]   ;;  %s434_s25 = smov [#allocation3]  }
   0x3   :  { %34 = dma.vmem_to_smem %s32_s20, 16, %s433_s24, [#allocation6]  }
   0x4   :  { %s435_s26 = smov 128   ;;  %s436_s27 = smov 8  }
   0x5   :  { %25 = dma.vmem_to_smem %s20_s23, 256, %s434_s25, [#allocation4], %s435_s26, %s435_s26, %s436_s27  }
   0x6   :  { %s40_s30 = sshll.u32 %s709_s3, 4  ;;  %s437_s6 = smov [#allocation7]   ;;  %s41_s30 = int_to_ptr.vmem [resolvable:$true] %s40_s30 }
   0x7   :  { %43 = dma.vmem_to_smem %s41_s30, 16, %s437_s6, [#allocation6]  }
   0x8   :  { %429 = dma.done.wait [#allocation4], 256  }
   0x9   :  { %430 = vsyncadd [#allocation4], 4294967040 }
   0xa   :  { %431 = dma.done.wait [#allocation6], 32  }
   0xb   :  { %432 = vsyncadd [#allocation6], 4294967264 }
   0xc   :  { %58 = sfence }
   0xd   :  { %s60_s1 = sld [smem:[#allocation3]]  ;;  %v494_v0 = vld [vmem:[%s706_s0] sm:$0x1]  ;;  %v499_v2 = vld [vmem:[%s706_s0 + $0x1] sm:$0x1] }
   0xe   :  { %s323_s2 = sld [smem:[#allocation3 + $0x80]]  ;;  %v506_v6 = vld [vmem:[%s706_s0 + $0x2] sm:$0x1]  ;;  %v521_v13 = vld [vmem:[%s706_s0 + $0x3] sm:$0x1] }
   0xf   :  { %s325_s7 = sld [smem:[#allocation3 + $0x100]]  ;;  %v538_v22 = vld [vmem:[%s706_s0 + $0x4] sm:$0x1]  ;;  %v547_v29 = vld [vmem:[%s706_s0 + $0x5] sm:$0x1] }
  0x10   :  { %s477_s8 = sld [smem:[#allocation3 + $0x180]]  ;;  %v566_v40 = vld [vmem:[%s706_s0 + $0x6] sm:$0x1]  ;;  %v588_v55 = vld [vmem:[%s706_s0 + $0x7] sm:$0x1] }
  0x11   :  { %s479_s9 = sld [smem:[#allocation3 + $0x200]]  ;;  %v598_v61 = vld [vmem:[%s706_s0 + $0x8] sm:$0x1] }
  0x12   :  { %s481_s10 = sld [smem:[#allocation3 + $0x280]] }
  0x13   :  { %s483_s11 = sld [smem:[#allocation3 + $0x300]]  ;;  %v61_v1 = vstv %s60_s1 }
  0x14   :  { %s485_s3 = sld [smem:[#allocation3 + $0x380]]  ;;  %v66_v3 = vstv %s323_s2  ;;  %v62_v4 = vmul.f32 %v61_v1, %v494_v0 }
  0x15   :  { %s487_s12 = sld [smem:[#allocation3 + $0x400]]  ;;  %v67_v5 = vmul.f32 %v499_v2, %v66_v3  ;;  %v72_v7 = vstv %s325_s7 }
  0x16   :  { %s489_s13 = sld [smem:[#allocation3 + $0x480]]  ;;  %v73_v10 = vmul.f32 %v506_v6, %v72_v7  ;;  %v78_v14 = vstv %s477_s8 }
  0x17   :  { %s340_s18 = sld [smem:[#allocation3 + $0x1]]  ;;  %v68_v9 = vadd.f32 %v67_v5, %v62_v4  ;;  %v79_v21 = vmul.f32 %v521_v13, %v78_v14  ;;  %v84_v23 = vstv %s479_s9 }
  0x18   :  { %s341_s19 = sld [smem:[#allocation3 + $0x81]]  ;;  %v85_v28 = vmul.f32 %v538_v22, %v84_v23  ;;  %v90_v30 = vstv %s481_s10  ;;  %v626_v23 = vld [vmem:[%s706_s0 + $0x9] sm:$0x1] }
  0x19   :  { %s342_s20 = sld [smem:[#allocation3 + $0x101]]  ;;  %v74_v20 = vadd.f32 %v73_v10, %v68_v9  ;;  %v91_v34 = vmul.f32 %v547_v29, %v90_v30  ;;  %v96_v37 = vstv %s483_s11 }
  0x1a   :  { %s343_s21 = sld [smem:[#allocation3 + $0x181]]  ;;  %v97_v52 = vmul.f32 %v566_v40, %v96_v37  ;;  %v102_v53 = vstv %s485_s3 }
  0x1b   :  { %s508_s24 = sld [smem:[#allocation5]]  ;;  %v80_v27 = vadd.f32 %v79_v21, %v74_v20  ;;  %v108_v62 = vstv %s487_s12  ;;  %v103_v5 = vmul.f32 %v588_v55, %v102_v53 }
  0x1c   :  { %s510_s25 = sld [smem:[#allocation3 + $0x201]]  ;;  %v114_v14 = vstv %s489_s13 }
  0x1d   :  { %s512_s26 = sld [smem:[#allocation7]]  ;;  %v125_v8 = vstv %s340_s18  ;;  %v86_v36 = vadd.f32 %v85_v28, %v80_v27  ;;  %v115_v37 = vmul.f32 %v626_v23, %v114_v14 }
  0x1e   :  { %v126_v11 = vmul.f32 %v125_v8, %v494_v0  ;;  %v128_v12 = vstv %s341_s19  ;;  %s516_s27 = sld [smem:[#allocation3 + $0x281]] }
  0x1f   :  { %v129_v15 = vmul.f32 %v499_v2, %v128_v12  ;;  %v132_v16 = vstv %s342_s20  ;;  %s525_s30 = sld [smem:[#allocation3 + $0x301]]  ;;  %v92_v51 = vadd.f32 %v91_v34, %v86_v36 }
  0x20   :  { %v133_v17 = vmul.f32 %v506_v6, %v132_v16  ;;  %v136_v18 = vstv %s343_s21  ;;  %s528_s6 = sld [smem:[#allocation3 + $0x381]] }
  0x21   :  { %v130_v19 = vadd.f32 %v129_v15, %v126_v11  ;;  %s530_s1 = sld [smem:[#allocation3 + $0x401]]  ;;  %v137_v25 = vmul.f32 %v521_v13, %v136_v18  ;;  %v98_v4 = vadd.f32 %v97_v52, %v92_v51  ;;  %v109_v11 = vmul.f32 %v598_v61, %v108_v62 }
  0x22   :  { %s533_s2 = sld [smem:[#allocation3 + $0x481]]  ;;  %v140_v26 = vstv %s510_s25  ;;  %v118_v53 = vstv %s508_s24 }
  0x23   :  { %v134_v24 = vadd.f32 %v133_v17, %v130_v19  ;;  %s352_s14 = sld [smem:[#allocation3 + $0x2]]  ;;  %v141_v32 = vmul.f32 %v538_v22, %v140_v26  ;;  %v104_v18 = vadd.f32 %v103_v5, %v98_v4 }
  0x24   :  { %s353_s15 = sld [smem:[#allocation3 + $0x82]]  ;;  %v144_v33 = vstv %s516_s27 }
  0x25   :  { %s354_s16 = sld [smem:[#allocation3 + $0x102]]  ;;  %v138_v31 = vadd.f32 %v137_v25, %v134_v24  ;;  %v145_v42 = vmul.f32 %v547_v29, %v144_v33  ;;  %v148_v45 = vstv %s525_s30  ;;  %v110_v36 = vadd.f32 %v109_v11, %v104_v18 }
  0x26   :  { %s355_s19 = sld [smem:[#allocation3 + $0x182]]  ;;  %v149_v57 = vmul.f32 %v566_v40, %v148_v45  ;;  %v152_v60 = vstv %s528_s6 }
  0x27   :  { %s551_s9 = sld [smem:[#allocation3 + $0x202]]  ;;  %v142_v41 = vadd.f32 %v141_v32, %v138_v31  ;;  %v153_v8 = vmul.f32 %v588_v55, %v152_v60  ;;  %v156_v9 = vstv %s530_s1  ;;  %v116_v51 = vadd.f32 %v115_v37, %v110_v36 }
  0x28   :  { %s554_s20 = sld [smem:[#allocation3 + $0x282]]  ;;  %v157_v19 = vmul.f32 %v598_v61, %v156_v9  ;;  %v160_v25 = vstv %s533_s2 }
  0x29   :  { %v172_v35 = vstv %s352_s14  ;;  %s557_s21 = sld [smem:[#allocation3 + $0x302]]  ;;  %v146_v56 = vadd.f32 %v145_v42, %v142_v41  ;;  %v161_v41 = vmul.f32 %v626_v23, %v160_v25  ;;  %v119_v4 = vadd.f32 %v118_v53, %v116_v51 }
  0x2a   :  { %s560_s22 = sld [smem:[#allocation5 + $0x1]]  ;;  %v173_v38 = vmul.f32 %v172_v35, %v494_v0  ;;  %v175_v39 = vstv %s353_s15 }
  0x2b   :  { %s569_s25 = sld [smem:[#allocation7 + $0x1]]  ;;  %v176_v43 = vmul.f32 %v499_v2, %v175_v39  ;;  %v179_v44 = vstv %s354_s16  ;;  %v150_v7 = vadd.f32 %v149_v57, %v146_v56 }
  0x2c   :  { %v180_v46 = vmul.f32 %v506_v6, %v179_v44  ;;  %v183_v47 = vstv %s355_s19  ;;  %s574_s11 = sld [smem:[#allocation3 + $0x382]] }
  0x2d   :  { %v177_v48 = vadd.f32 %v176_v43, %v173_v38  ;;  %v184_v49 = vmul.f32 %v521_v13, %v183_v47  ;;  %v187_v50 = vstv %s551_s9  ;;  %s578_s27 = sld [smem:[#allocation3 + $0x402]]  ;;  %v154_v24 = vadd.f32 %v153_v8, %v150_v7 }
  0x2e   :  { %v191_v54 = vstv %s554_s20  ;;  %s583_s28 = sld [smem:[#allocation3 + $0x482]]  ;;  %v188_v59 = vmul.f32 %v538_v22, %v187_v50 }
  0x2f   :  { %v181_v58 = vadd.f32 %v180_v46, %v177_v48  ;;  %s364_s7 = sld [smem:[#allocation3 + $0x3]]  ;;  %v192_v1 = vmul.f32 %v547_v29, %v191_v54  ;;  %v195_v3 = vstv %s557_s21  ;;  %v158_v44 = vadd.f32 %v157_v19, %v154_v24 }
  0x30   :  { %s593_s8 = sld [smem:[#allocation3 + $0x83]]  ;;  %v196_v12 = vmul.f32 %v566_v40, %v195_v3  ;;  %v164_v62 = vstv %s560_s22 }
  0x31   :  { %v185_v63 = vadd.f32 %v184_v49, %v181_v58  ;;  %s366_s15 = sld [smem:[#allocation3 + $0x103]]  ;;  %v162_v57 = vadd.f32 %v161_v41, %v158_v44 }
  0x32   :  { %s604_s16 = sld [smem:[#allocation3 + $0x183]]  ;;  %v199_v16 = vstv %s574_s11 }
  0x33   :  { %v189_v10 = vadd.f32 %v188_v59, %v185_v63  ;;  %s608_s6 = sld [smem:[#allocation3 + $0x203]]  ;;  %v200_v30 = vmul.f32 %v588_v55, %v199_v16  ;;  %v203_v33 = vstv %s578_s27  ;;  %v165_v14 = vadd.f32 %v164_v62, %v162_v57 }
  0x34   :  { %s612_s12 = sld [smem:[#allocation3 + $0x283]]  ;;  %v204_v46 = vmul.f32 %v598_v61, %v203_v33  ;;  %v207_v48 = vstv %s583_s28 }
  0x35   :  { %v193_v15 = vadd.f32 %v192_v1, %v189_v10  ;;  %v219_v17 = vstv %s364_s7  ;;  %s616_s17 = sld [smem:[#allocation3 + $0x303]]  ;;  %v208_v59 = vmul.f32 %v626_v23, %v207_v48 }
  0x36   :  { %v220_v20 = vmul.f32 %v219_v17, %v494_v0  ;;  %v222_v21 = vstv %s593_s8  ;;  %s621_s1 = sld [smem:[#allocation3 + $0x383]] }
  0x37   :  { %s629_s13 = sld [smem:[#allocation5 + $0x2]]  ;;  %v223_v26 = vmul.f32 %v499_v2, %v222_v21  ;;  %v226_v27 = vstv %s366_s15  ;;  %v197_v28 = vadd.f32 %v196_v12, %v193_v15 }
  0x38   :  { %v227_v31 = vmul.f32 %v506_v6, %v226_v27  ;;  %v230_v32 = vstv %s604_s16  ;;  %s635_s9 = sld [smem:[#allocation3 + $0x403]] }
  0x39   :  { %v224_v34 = vadd.f32 %v223_v26, %v220_v20  ;;  %v231_v35 = vmul.f32 %v521_v13, %v230_v32  ;;  %s639_s0 = sld [smem:[#allocation3 + $0x483]]  ;;  %v234_v38 = vstv %s608_s6  ;;  %v201_v45 = vadd.f32 %v200_v30, %v197_v28 }
  0x3a   :  { %v238_v39 = vstv %s612_s12  ;;  %s644_s2 = sld [smem:[#allocation5 + $0x3]]  ;;  %v235_v43 = vmul.f32 %v538_v22, %v234_v38  ;;  %v120_v28 = vmax.f32 %v119_v4, 0.0  ;;  %v166_v30 = vmax.f32 %v165_v14, 0.0 }
  0x3b   :  { %v228_v42 = vadd.f32 %v227_v31, %v224_v34  ;;  %s376_s20 = sld [smem:[#allocation3 + $0x4]]  ;;  %v242_v47 = vstv %s616_s17  ;;  %v239_v50 = vmul.f32 %v547_v29, %v238_v39  ;;  %v205_v58 = vadd.f32 %v204_v46, %v201_v45 }
  0x3c   :  { %s377_s21 = sld [smem:[#allocation3 + $0x84]]  ;;  %v246_v52 = vstv %s621_s1  ;;  %v243_v56 = vmul.f32 %v566_v40, %v242_v47  ;;  %v168_v31 = vstv %s569_s25 }
  0x3d   :  { %v232_v49 = vadd.f32 %v231_v35, %v228_v42  ;;  %s378_s10 = sld [smem:[#allocation3 + $0x104]]  ;;  %v247_v1 = vmul.f32 %v588_v55, %v246_v52  ;;  %v209_v15 = vadd.f32 %v208_v59, %v205_v58 }
  0x3e   :  { %s653_s23 = sld [smem:[#allocation3 + $0x184]]  ;;  %v250_v60 = vstv %s635_s9 }
  0x3f   :  { %v236_v54 = vadd.f32 %v235_v43, %v232_v49  ;;  %s657_s11 = sld [smem:[#allocation3 + $0x204]]  ;;  %v254_v5 = vstv %s639_s0  ;;  %v251_v10 = vmul.f32 %v598_v61, %v250_v60 }
  0x40   :  { %s661_s27 = sld [smem:[#allocation3 + $0x284]]  ;;  %v255_v18 = vmul.f32 %v626_v23, %v254_v5  ;;  %v258_v36 = vstv %s644_s2 }
  0x41   :  { %v240_v63 = vadd.f32 %v239_v50, %v236_v54  ;;  %v266_v3 = vstv %s376_s20  ;;  %s665_s28 = sld [smem:[#allocation3 + $0x304]] }
  0x42   :  { %v267_v7 = vmul.f32 %v266_v3, %v494_v0  ;;  %v269_v8 = vstv %s377_s21  ;;  %s669_s24 = sld [smem:[#allocation3 + $0x384]] }
  0x43   :  { %v244_v9 = vadd.f32 %v243_v56, %v240_v63  ;;  %v270_v11 = vmul.f32 %v499_v2, %v269_v8  ;;  %v273_v12 = vstv %s378_s10  ;;  %s675_s22 = sld [smem:[#allocation3 + $0x404]]  ;;  %v211_v2 = vstv %s629_s13 }
  0x44   :  { %v274_v16 = vmul.f32 %v506_v6, %v273_v12  ;;  %v277_v17 = vstv %s653_s23  ;;  %s677_s29 = sld [smem:[#allocation7 + $0x2]]  ;;  %v122_v6 = vstv %s512_s26  ;;  %v212_v33 = vadd.f32 %v211_v2, %v209_v15 }
  0x45   :  { %v248_v0 = vadd.f32 %v247_v1, %v244_v9  ;;  %v271_v19 = vadd.f32 %v270_v11, %v267_v7  ;;  %v278_v20 = vmul.f32 %v521_v13, %v277_v17  ;;  %v281_v21 = vstv %s657_s11  ;;  %s684_s30 = sld [smem:[#allocation3 + $0x484]] }
  0x46   :  { %v285_v24 = vstv %s661_s27  ;;  %v282_v27 = vmul.f32 %v538_v22, %v281_v21  ;;  %s375_s7 = sld [smem:[#allocation7 + $0x3]]  ;;  %v123_v41 = vmul.f32 %v122_v6, %v120_v28  ;;  %v169_v22 = vmul.f32 %v168_v31, %v166_v30 }
  0x47   :  { %v252_v25 = vadd.f32 %v251_v10, %v248_v0  ;;  %v275_v26 = vadd.f32 %v274_v16, %v271_v19  ;;  %v289_v32 = vstv %s665_s28  ;;  %v286_v35 = vmul.f32 %v547_v29, %v285_v24  ;;  %s386_s26 = sld [smem:[#allocation5 + $0x4]] }
  0x48   :  { %v293_v37 = vstv %s669_s24  ;;  %v290_v39 = vmul.f32 %v566_v40, %v289_v32  ;;  %v213_v43 = vmax.f32 %v212_v33, 0.0  ;;  %v170_v50 = vadd.f32 %v169_v22, %v123_v41  ;;  %s387_s25 = sld [smem:[#allocation7 + $0x4]] }
  0x49   :  { %v256_v34 = vadd.f32 %v255_v18, %v252_v25  ;;  %v279_v13 = vadd.f32 %v278_v20, %v275_v26  ;;  %v297_v42 = vstv %s675_s22  ;;  %v294_v46 = vmul.f32 %v588_v55, %v293_v37 }
  0x4a   :  { %v215_v47 = vstv %s677_s29  ;;  %v298_v29 = vmul.f32 %v598_v61, %v297_v42  ;;  %v313_v61 = vstv %s710_s4 }
  0x4b   :  { %v283_v38 = vadd.f32 %v282_v27, %v279_v13  ;;  %v259_v44 = vadd.f32 %v258_v36, %v256_v34  ;;  %v301_v48 = vstv %s684_s30  ;;  %v216_v51 = vmul.f32 %v215_v47, %v213_v43 }
  0x4c   :  { %v302_v40 = vmul.f32 %v626_v23, %v301_v48  ;;  %v262_v54 = vstv %s375_s7 }
  0x4d   :  { %v287_v45 = vadd.f32 %v286_v35, %v283_v38  ;;  %v260_v52 = vmax.f32 %v259_v44, 0.0  ;;  %v305_v57 = vstv %s386_s26  ;;  %v217_v58 = vadd.f32 %v216_v51, %v170_v50 }
  0x4e   :  { %v309_v55 = vstv %s387_s25 }
  0x4f   :  { %v291_v49 = vadd.f32 %v290_v39, %v287_v45  ;;  %v263_v59 = vmul.f32 %v262_v54, %v260_v52 }
  0x51   :  { %v295_v53 = vadd.f32 %v294_v46, %v291_v49  ;;  %v264_v63 = vadd.f32 %v263_v59, %v217_v58 }
  0x53   :  { %v299_v56 = vadd.f32 %v298_v29, %v295_v53 }
  0x55   :  { %v303_v60 = vadd.f32 %v302_v40, %v299_v56 }
  0x57   :  { %v306_v62 = vadd.f32 %v305_v57, %v303_v60 }
  0x59   :  { %v307_v1 = vmax.f32 %v306_v62, 0.0 }
  0x5b   :  { %v310_v3 = vmul.f32 %v309_v55, %v307_v1 }
  0x5d   :  { %v311_v4 = vadd.f32 %v310_v3, %v264_v63 }
  0x5f   :  { %v314_v5 = vadd.f32 %v313_v61, %v311_v4 }
  0x61   :  { %315 = vst [vmem:[%s711_s5] sm:$0x1] %v314_v5 }
  0x62   :  { %320 = vsyncpa [#allocation4], 1 }
  0x63   :  { %321 = vsyncpa [#allocation6], 1 }

</bundles_post_ra>
